<compile_context>
chip_gen: v5e
topology: v5e:2x2
jax: 0.10.0
libtpu: 0.0.40
codegen_flags: <defaults>
</compile_context>

<pallas_src>
import functools

import jax
import jax.numpy as jnp
from jax import lax
from jax.experimental import pallas as pl
from jax.experimental.pallas import tpu as pltpu


_LINEAR_TILE_ROWS = 512                 # cap for the streaming linear path
_VMEM_LIMIT = 32 * 1024 * 1024          # safe on v5e/v6e (128 MiB) and v7x (64 MiB)
_RBF_INPUT_BUDGET = 12 * 1024 * 1024    # ti + tj, double-buffered
_LINEAR_INPUT_BUDGET = 8 * 1024 * 1024  # src + tgt strips, double-buffered
_NSPLIT = 2                             # leading "parallel" axis (2 TCs on v7x)


def _round_up(x, m):
    return ((x + m - 1) // m) * m


def _cdiv(a, b):
    return -(-a // b)


# ----------------------------------------------------------------------------
# Linear MMD: tiled streaming column-sum reduction (no padded copies)
# ----------------------------------------------------------------------------
def _linear_mmd_kernel(src_ref, tgt_ref, out_ref, ssum_ref, tsum_ref,
                       *, n_src, n_tgt, tile):
    i = pl.program_id(0)

    @pl.when(i == 0)
    def _():
        ssum_ref[...] = jnp.zeros_like(ssum_ref)
        tsum_ref[...] = jnp.zeros_like(tsum_ref)

    # Ragged / clamped strips: mask rows beyond the real batch sizes.
    row = lax.broadcasted_iota(jnp.int32, (tile, 1), 0) + i * tile
    s = jnp.where(row < n_src, src_ref[...].astype(jnp.float32), 0.0)
    t = jnp.where(row < n_tgt, tgt_ref[...].astype(jnp.float32), 0.0)
    ssum_ref[...] += jnp.sum(s, axis=0, keepdims=True)
    tsum_ref[...] += jnp.sum(t, axis=0, keepdims=True)

    @pl.when(i == pl.num_programs(0) - 1)
    def _():
        delta = ssum_ref[...] * (1.0 / float(n_src)) \
              - tsum_ref[...] * (1.0 / float(n_tgt))
        out_ref[...] = jnp.sum(delta * delta, axis=1, keepdims=True)


# ----------------------------------------------------------------------------
# RBF pass 1: closed-form bandwidth + per-row squared norms (tiled O(N*D))
# ----------------------------------------------------------------------------
def _rbf_stats_kernel(tot_ref, bw_ref, sq_ref, colsum_ref, sumsq_ref,
                      *, n_real, kernel_mul, kernel_num):
    i = pl.program_id(0)

    @pl.when(i == 0)
    def _():
        colsum_ref[...] = jnp.zeros_like(colsum_ref)
        sumsq_ref[...] = jnp.zeros_like(sumsq_ref)

    t = tot_ref[...].astype(jnp.float32)                        # (tile, D)
    colsum_ref[...] += jnp.sum(t, axis=0, keepdims=True)        # (1, D)
    row_sq = jnp.sum(t * t, axis=1, keepdims=True)              # (tile, 1)
    sq_ref[...] = row_sq                                        # hoisted for pass 2
    sumsq_ref[...] += jnp.sum(row_sq, axis=0, keepdims=True)    # (1, 1)

    @pl.when(i == pl.num_programs(0) - 1)
    def _():
        # sum_ij ||t_i - t_j||^2 = 2*N*sum_i||t_i||^2 - 2*||sum_i t_i||^2
        s = colsum_ref[...]
        s2 = jnp.sum(s * s, axis=1, keepdims=True)
        total_l2 = 2.0 * float(n_real) * sumsq_ref[...] - 2.0 * s2
        bw = total_l2 * (1.0 / float(n_real * n_real - n_real))
        bw_ref[...] = bw * (1.0 / (kernel_mul ** (kernel_num // 2)))


# ----------------------------------------------------------------------------
# RBF pass 2: upper-triangular tile-pair sweep, w^T K w via MXU matvec
# ----------------------------------------------------------------------------
def _rbf_pair_kernel(ii_ref, jj_ref, sc_ref,            # scalar-prefetch (SMEM)
                     bw_ref, ti_ref, tj_ref, sqi_ref, sqjt_ref, wi_ref, wj_ref,
                     out_ref,
                     *, pairs_per_core, kernel_mul, kernel_num):
    c = pl.program_id(0)
    p = pl.program_id(1)
    pair = c * pairs_per_core + p

    @pl.when(p == 0)
    def _():
        out_ref[...] = jnp.zeros_like(out_ref)

    # Gram tile on the MXU, contracting the lane dim of BOTH operands
    # (no explicit transpose of the (tile, D) operand).
    gram = lax.dot_general(ti_ref[...], tj_ref[...],
                           dimension_numbers=(((1,), (1,)), ((), ())),
                           preferred_element_type=jnp.float32)   # (tile, tile)
    # Row norms were hoisted to pass 1; (tile,1) + (1,tile) broadcast.
    l2 = jnp.maximum(sqi_ref[...] + sqjt_ref[...] - 2.0 * gram, 0.0)

    bw = bw_ref[0, 0]
    if kernel_mul == 2.0:
        # One transcendental per element; remaining bandwidths via squaring:
        #   exp(-l2/(bw*2^i)) = exp(-l2/(bw*2^(i+1)))^2
        inv_widest = 1.0 / (bw * (2.0 ** (kernel_num - 1)))
        term = jnp.exp(-l2 * inv_widest)
        kern = term
        for _ in range(kernel_num - 1):
            term = term * term
            kern = kern + term
    else:
        kern = jnp.zeros_like(l2)
        for k in range(kernel_num):
            kern = kern + jnp.exp(-l2 * (1.0 / (bw * (kernel_mul ** k))))

    # Exact weighted bilinear form replacing the 4 quadrant means:
    #   w = +1/b (source rows), -1/m (target rows), 0 (padding rows).
    # (tile,tile) @ (tile,1) rides the MXU; final reduce is a tiny sublane sum.
    rowsum = lax.dot_general(kern, wj_ref[...],
                             dimension_numbers=(((1,), (0,)), ((), ())),
                             preferred_element_type=jnp.float32)  # (tile, 1)
    tile_total = jnp.sum(wi_ref[...] * rowsum)                    # scalar

    # Gram symmetry: diag pair -> x1, off-diag pair -> x2, padded pair -> x0.
    scale = sc_ref[pair].astype(jnp.float32)
    out_ref[...] += scale * tile_total   # broadcast add into (1, 8, 128) block


# ----------------------------------------------------------------------------
# Tile selection (D- and VMEM-aware, padding-waste trimmed)
# ----------------------------------------------------------------------------
def _choose_rbf_tile(n, d, itemsize, max_tile=None):
    cap = 512 if d <= 256 else (256 if d < 4096 else 128)
    if max_tile is not None:
        cap = min(cap, max_tile)
    # 2 inputs x 2 buffers x tile x D x itemsize must fit the input budget.
    mem_cap = max(128, _RBF_INPUT_BUDGET // (2 * 2 * d * itemsize))
    target = max(128, (min(cap, mem_cap) // 128) * 128)
    # TODO(synk): for D so large that even a 128-row tile misses the budget,
    #             raise vmem_limit_bytes / shrink further.
    if n <= target:
        return _round_up(n, 8), 1
    n_blk = _cdiv(n, target)
    tile = _round_up(_cdiv(n, n_blk), 128)   # trimmed, lane-aligned
    return tile, n_blk


def _choose_linear_tile(rows, d, max_tile=None):
    cap = _LINEAR_TILE_ROWS if max_tile is None else min(_LINEAR_TILE_ROWS,
                                                         max_tile)
    mem_cap = max(8, (_LINEAR_INPUT_BUDGET // (2 * 2 * d * 4)) // 8 * 8)
    tile = min(cap, mem_cap, _round_up(rows, 8))
    return max(8, (tile // 8) * 8)


def _strip_map(num_blocks, grid_n):
    if num_blocks == grid_n:
        return lambda i: (i, 0)
    return lambda i: (jnp.minimum(i, num_blocks - 1), 0)


# ----------------------------------------------------------------------------
# Wrapper reproducing MMD_loss.forward
# ----------------------------------------------------------------------------
class MMDLossPallas:
    def __init__(self, kernel_type='linear', kernel_mul=2.0, kernel_num=5,
                 gram_dtype=jnp.float32, max_tile=None):
        self.kernel_type = kernel_type
        self.kernel_mul = float(kernel_mul)
        self.kernel_num = int(kernel_num)
        self.fix_sigma = None
        self.gram_dtype = gram_dtype   # jnp.bfloat16 -> fast MXU / half DMA
        self.max_tile = max_tile

    # ---- linear path -------------------------------------------------------
    def _linear(self, source, target):
        ns, d = source.shape
        nt, d2 = target.shape
        assert d == d2
        tile = _choose_linear_tile(max(ns, nt), d, self.max_tile)
        g_src = _cdiv(ns, tile)
        g_tgt = _cdiv(nt, tile)
        grid_n = max(g_src, g_tgt)

        kernel = functools.partial(_linear_mmd_kernel,
                                   n_src=ns, n_tgt=nt, tile=tile)
        out = pl.pallas_call(
            kernel,
            out_shape=jax.ShapeDtypeStruct((1, 1), jnp.float32),
            grid=(grid_n,),
            in_specs=[pl.BlockSpec((tile, d), _strip_map(g_src, grid_n)),
                      pl.BlockSpec((tile, d), _strip_map(g_tgt, grid_n))],
            out_specs=pl.BlockSpec((1, 1), lambda i: (0, 0)),
            scratch_shapes=[pltpu.VMEM((1, d), jnp.float32),
                            pltpu.VMEM((1, d), jnp.float32)],
            compiler_params=pltpu.CompilerParams(
                dimension_semantics=("arbitrary",),
                vmem_limit_bytes=_VMEM_LIMIT),
        )(source, target)
        return out[0, 0]

    # ---- rbf path ----------------------------------------------------------
    def _rbf(self, source, target):
        ns, d = source.shape
        nt, d2 = target.shape
        assert d == d2
        n = ns + nt
        itemsize = jnp.dtype(self.gram_dtype).itemsize
        tile, n_blk = _choose_rbf_tile(n, d, itemsize, self.max_tile)
        n_pad = tile * n_blk

        # Fuse source/target into one tile-padded buffer (padding rows are
        # zero and carry weight 0, so they are exactly harmless).
        total = jnp.zeros((n_pad, d), self.gram_dtype)
        total = total.at[:ns].set(source.astype(self.gram_dtype))
        total = total.at[ns:n].set(target.astype(self.gram_dtype))

        # Per-row weights: +1/b (source), -1/m (target), 0 (padding).
        w = jnp.zeros((n_pad, 1), jnp.float32)
        w = w.at[:ns].set(1.0 / float(ns)).at[ns:n].set(-1.0 / float(nt))

        # ---- pass 1: bandwidth + row norms (tiled O(N*D)) -------------------
        stats_kernel = functools.partial(
            _rbf_stats_kernel, n_real=n,
            kernel_mul=self.kernel_mul, kernel_num=self.kernel_num)
        bw, row_sq = pl.pallas_call(
            stats_kernel,
            out_shape=(jax.ShapeDtypeStruct((1, 1), jnp.float32),
                       jax.ShapeDtypeStruct((n_pad, 1), jnp.float32)),
            grid=(n_blk,),
            in_specs=[pl.BlockSpec((tile, d), lambda i: (i, 0))],
            out_specs=(pl.BlockSpec((1, 1), lambda i: (0, 0)),
                       pl.BlockSpec((tile, 1), lambda i: (i, 0))),
            scratch_shapes=[pltpu.VMEM((1, d), jnp.float32),
                            pltpu.VMEM((1, 1), jnp.float32)],
            compiler_params=pltpu.CompilerParams(
                dimension_semantics=("arbitrary",),
                vmem_limit_bytes=_VMEM_LIMIT),
        )(total)
        sq_t = row_sq.reshape(1, n_pad)   # lane-major copy for the j side

        # ---- pass 2: upper-triangular pair sweep ----------------------------
        pairs = [(a, b) for a in range(n_blk) for b in range(a, n_blk)]
        n_pairs = len(pairs)
        per_core = _cdiv(n_pairs, _NSPLIT)
        tot_pairs = per_core * _NSPLIT
        ii_host = [0] * tot_pairs
        jj_host = [0] * tot_pairs
        sc_host = [0] * tot_pairs        # 0 = padded pair (no contribution)
        for p, (a, b) in enumerate(pairs):
            ii_host[p] = a
            jj_host[p] = b
            sc_host[p] = 1 if a == b else 2
        pair_i = jnp.asarray(ii_host, dtype=jnp.int32)
        pair_j = jnp.asarray(jj_host, dtype=jnp.int32)
        pair_s = jnp.asarray(sc_host, dtype=jnp.int32)

        pair_kernel = functools.partial(
            _rbf_pair_kernel, pairs_per_core=per_core,
            kernel_mul=self.kernel_mul, kernel_num=self.kernel_num)

        out = pl.pallas_call(
            pair_kernel,
            out_shape=jax.ShapeDtypeStruct((_NSPLIT, 8, 128), jnp.float32),
            grid_spec=pltpu.PrefetchScalarGridSpec(
                num_scalar_prefetch=3,
                grid=(_NSPLIT, per_core),
                in_specs=[
                    pl.BlockSpec(memory_space=pltpu.MemorySpace.SMEM),  # bw
                    pl.BlockSpec((tile, d),
                                 lambda c, p, ii, jj, sc:
                                 (ii[c * per_core + p], 0)),            # ti
                    pl.BlockSpec((tile, d),
                                 lambda c, p, ii, jj, sc:
                                 (jj[c * per_core + p], 0)),            # tj
                    pl.BlockSpec((tile, 1),
                                 lambda c, p, ii, jj, sc:
                                 (ii[c * per_core + p], 0)),            # sq_i
                    pl.BlockSpec((1, tile),
                                 lambda c, p, ii, jj, sc:
                                 (0, jj[c * per_core + p])),            # sq_j^T
                    pl.BlockSpec((tile, 1),
                                 lambda c, p, ii, jj, sc:
                                 (ii[c * per_core + p], 0)),            # w_i
                    pl.BlockSpec((tile, 1),
                                 lambda c, p, ii, jj, sc:
                                 (jj[c * per_core + p], 0)),            # w_j
                ],
                out_specs=pl.BlockSpec((1, 8, 128),
                                       lambda c, p, ii, jj, sc: (c, 0, 0)),
            ),
            compiler_params=pltpu.CompilerParams(
                dimension_semantics=("parallel", "arbitrary"),
                vmem_limit_bytes=_VMEM_LIMIT),
        )(pair_i, pair_j, pair_s, bw, total, total, row_sq, sq_t, w, w)

        # Each per-split (8,128) block holds its total broadcast everywhere.
        return jnp.sum(out[:, 0, 0])

    def __call__(self, source, target):
        if self.kernel_type == 'linear':
            return self._linear(source, target)
        elif self.kernel_type == 'rbf':
            return self._rbf(source, target)
        raise ValueError(self.kernel_type)


# ----------------------------------------------------------------------------
# Pure-JAX references (correctness checks only)
# ----------------------------------------------------------------------------
def _ref_linear(source, target):
    delta = jnp.mean(source, axis=0) - jnp.mean(target, axis=0)
    return jnp.dot(delta, delta)


def _ref_rbf(source, target, kernel_mul=2.0, kernel_num=5):
    total = jnp.concatenate([source, target], axis=0)
    n = total.shape[0]
    diff = total[None, :, :] - total[:, None, :]
    l2 = jnp.sum(diff * diff, axis=2)
    bw = jnp.sum(l2) / (n * n - n)
    bw = bw / (kernel_mul ** (kernel_num // 2))
    kern = sum(jnp.exp(-l2 / (bw * kernel_mul ** i)) for i in range(kernel_num))
    b = source.shape[0]
    xx = jnp.mean(kern[:b, :b])
    yy = jnp.mean(kern[b:, b:])
    xy = jnp.mean(kern[:b, b:])
    yx = jnp.mean(kern[b:, :b])
    return xx + yy - xy - yx


# ----------------------------------------------------------------------------
# Main
# ----------------------------------------------------------------------------
if __name__ == "__main__":
    key = jax.random.PRNGKey(0)
    k1, k2, k3, k4 = jax.random.split(key, 4)

    # --- small shapes (single tile), same as the module's [n_samples, D] ----
    B, D = 8, 32
    source = jax.random.normal(k1, (B, D), dtype=jnp.float32)
    target = jax.random.normal(k2, (B, D), dtype=jnp.float32) + 0.5

    loss_lin = jax.block_until_ready(MMDLossPallas('linear')(source, target))
    ref_lin = _ref_linear(source, target)
    assert jnp.allclose(loss_lin, ref_lin, rtol=1e-5, atol=1e-5), (loss_lin, ref_lin)

    loss_rbf = jax.block_until_ready(
        MMDLossPallas('rbf', kernel_mul=2.0, kernel_num=5)(source, target))
    ref_rbf = _ref_rbf(source, target, kernel_mul=2.0, kernel_num=5)
    assert jnp.allclose(loss_rbf, ref_rbf, rtol=1e-3, atol=5e-4), (loss_rbf, ref_rbf)

    # bf16 Gram variant (halves DMA, ~4x MXU rate on v6e/v7x); looser tol.
    loss_bf16 = jax.block_until_ready(
        MMDLossPallas('rbf', gram_dtype=jnp.bfloat16)(source, target))
    assert jnp.allclose(loss_bf16, ref_rbf, rtol=5e-2, atol=5e-3), (loss_bf16, ref_rbf)

    # --- multi-block / ragged / mismatched-batch path (forced small tiles) --
    ns, nt = 100, 40
    src2 = jax.random.normal(k3, (ns, D), dtype=jnp.float32)
    tgt2 = jax.random.normal(k4, (nt, D), dtype=jnp.float32) + 0.25

    loss_lin2 = jax.block_until_ready(
        MMDLossPallas('linear', max_tile=32)(src2, tgt2))
    ref_lin2 = _ref_linear(src2, tgt2)
    assert jnp.allclose(loss_lin2, ref_lin2, rtol=1e-5, atol=1e-5), (loss_lin2, ref_lin2)

    loss_rbf2 = jax.block_until_ready(
        MMDLossPallas('rbf', max_tile=128)(src2, tgt2))
    ref_rbf2 = _ref_rbf(src2, tgt2)
    assert jnp.allclose(loss_rbf2, ref_rbf2, rtol=2e-3, atol=1e-3), (loss_rbf2, ref_rbf2)

    print("KERNEL_OK")
</pallas_src>

<mosaic_0001>
module attributes {stable_mosaic.version = 11 : i64} {
  func.func @_linear_mmd_kernel(%arg0: i32, %arg1: memref<8x32xf32, #tpu.memory_space<vmem>>, %arg2: memref<8x32xf32, #tpu.memory_space<vmem>>, %arg3: memref<1x1xf32, #tpu.memory_space<vmem>>, %arg4: memref<1x32xf32, #tpu.memory_space<vmem>>, %arg5: memref<1x32xf32, #tpu.memory_space<vmem>>) attributes {dimension_semantics = [#tpu.dimension_semantics<arbitrary>], iteration_bounds = array<i64: 1>, scalar_prefetch = 0 : i64, scratch_operands = 2 : i64, tpu.core_type = #tpu.core_type<tc>, window_params = [{transform_indices = @transform_0, window_bounds = array<i64: 8, 32>}, {transform_indices = @transform_1, window_bounds = array<i64: 8, 32>}, {pipeline_mode = #tpu.pipeline_mode<synchronous>, transform_indices = @transform_2, window_bounds = array<i64: 1, 1>}]} {
    %c0_i32 = arith.constant 0 : i32
    %0 = arith.cmpi eq, %arg0, %c0_i32 : i32
    %1 = arith.extui %0 : i1 to i32
    %c0_i32_0 = arith.constant 0 : i32
    %2 = arith.cmpi ne, %1, %c0_i32_0 : i32
    scf.if %2 {
      %cst_19 = arith.constant 0.000000e+00 : f32
      %34 = vector.broadcast %cst_19 : f32 to vector<1x32xf32>
      %c0_20 = arith.constant 0 : index
      %c0_21 = arith.constant 0 : index
      %35 = vector.load %arg4[%c0_20, %c0_21] : memref<1x32xf32, #tpu.memory_space<vmem>>, vector<1x32xf32>
      tpu.vector_store %arg4[%c0_20, %c0_21], %34 {strides = array<i32>} : memref<1x32xf32, #tpu.memory_space<vmem>>, vector<1x32xf32>,
      %cst_22 = arith.constant 0.000000e+00 : f32
      %36 = vector.broadcast %cst_22 : f32 to vector<1x32xf32>
      %c0_23 = arith.constant 0 : index
      %c0_24 = arith.constant 0 : index
      %37 = vector.load %arg5[%c0_23, %c0_24] : memref<1x32xf32, #tpu.memory_space<vmem>>, vector<1x32xf32>
      tpu.vector_store %arg5[%c0_23, %c0_24], %36 {strides = array<i32>} : memref<1x32xf32, #tpu.memory_space<vmem>>, vector<1x32xf32>,
    } else {
    }
    %3 = tpu.iota {dimensions = array<i32: 0>} : vector<8x1xi32>
    %c8_i32 = arith.constant 8 : i32
    %4 = arith.muli %arg0, %c8_i32 : i32
    %5 = vector.broadcast %4 : i32 to vector<8x1xi32>
    %6 = arith.addi %3, %5 : vector<8x1xi32>
    %c8_i32_1 = arith.constant 8 : i32
    %7 = vector.broadcast %c8_i32_1 : i32 to vector<8x1xi32>
    %8 = arith.cmpi slt, %6, %7 : vector<8x1xi32>
    %c0 = arith.constant 0 : index
    %c0_2 = arith.constant 0 : index
    %9 = vector.load %arg1[%c0, %c0_2] : memref<8x32xf32, #tpu.memory_space<vmem>>, vector<8x32xf32>
    %cst = arith.constant 0.000000e+00 : f32
    %10 = vector.shape_cast %8 : vector<8x1xi1> to vector<8x1xi1>
    %11 = vector.broadcast %10 : vector<8x1xi1> to vector<8x32xi1>
    %12 = vector.broadcast %cst : f32 to vector<8x32xf32>
    %13 = arith.select %11, %9, %12 : vector<8x32xi1>, vector<8x32xf32>
    %c8_i32_3 = arith.constant 8 : i32
    %14 = vector.broadcast %c8_i32_3 : i32 to vector<8x1xi32>
    %15 = arith.cmpi slt, %6, %14 : vector<8x1xi32>
    %c0_4 = arith.constant 0 : index
    %c0_5 = arith.constant 0 : index
    %16 = vector.load %arg2[%c0_4, %c0_5] : memref<8x32xf32, #tpu.memory_space<vmem>>, vector<8x32xf32>
    %cst_6 = arith.constant 0.000000e+00 : f32
    %17 = vector.shape_cast %15 : vector<8x1xi1> to vector<8x1xi1>
    %18 = vector.broadcast %17 : vector<8x1xi1> to vector<8x32xi1>
    %19 = vector.broadcast %cst_6 : f32 to vector<8x32xf32>
    %20 = arith.select %18, %16, %19 : vector<8x32xi1>, vector<8x32xf32>
    %c0_7 = arith.constant 0 : index
    %c0_8 = arith.constant 0 : index
    %21 = vector.load %arg4[%c0_7, %c0_8] : memref<1x32xf32, #tpu.memory_space<vmem>>, vector<1x32xf32>
    %cst_9 = arith.constant dense<0.000000e+00> : vector<32xf32>
    %22 = vector.multi_reduction <add>, %13, %cst_9 [0] : vector<8x32xf32> to vector<32xf32>
    %23 = vector.shape_cast %22 : vector<32xf32> to vector<1x32xf32>
    %24 = arith.addf %21, %23 : vector<1x32xf32>
    %c0_10 = arith.constant 0 : index
    %c0_11 = arith.constant 0 : index
    %25 = vector.load %arg4[%c0_10, %c0_11] : memref<1x32xf32, #tpu.memory_space<vmem>>, vector<1x32xf32>
    tpu.vector_store %arg4[%c0_10, %c0_11], %24 {strides = array<i32>} : memref<1x32xf32, #tpu.memory_space<vmem>>, vector<1x32xf32>,
    %c0_12 = arith.constant 0 : index
    %c0_13 = arith.constant 0 : index
    %26 = vector.load %arg5[%c0_12, %c0_13] : memref<1x32xf32, #tpu.memory_space<vmem>>, vector<1x32xf32>
    %cst_14 = arith.constant dense<0.000000e+00> : vector<32xf32>
    %27 = vector.multi_reduction <add>, %20, %cst_14 [0] : vector<8x32xf32> to vector<32xf32>
    %28 = vector.shape_cast %27 : vector<32xf32> to vector<1x32xf32>
    %29 = arith.addf %26, %28 : vector<1x32xf32>
    %c0_15 = arith.constant 0 : index
    %c0_16 = arith.constant 0 : index
    %30 = vector.load %arg5[%c0_15, %c0_16] : memref<1x32xf32, #tpu.memory_space<vmem>>, vector<1x32xf32>
    tpu.vector_store %arg5[%c0_15, %c0_16], %29 {strides = array<i32>} : memref<1x32xf32, #tpu.memory_space<vmem>>, vector<1x32xf32>,
    %c0_i32_17 = arith.constant 0 : i32
    %31 = arith.cmpi eq, %arg0, %c0_i32_17 : i32
    %32 = arith.extui %31 : i1 to i32
    %c0_i32_18 = arith.constant 0 : i32
    %33 = arith.cmpi ne, %32, %c0_i32_18 : i32
    scf.if %33 {
      %c0_19 = arith.constant 0 : index
      %c0_20 = arith.constant 0 : index
      %34 = vector.load %arg4[%c0_19, %c0_20] : memref<1x32xf32, #tpu.memory_space<vmem>>, vector<1x32xf32>
      %cst_21 = arith.constant 1.250000e-01 : f32
      %35 = vector.broadcast %cst_21 : f32 to vector<1x32xf32>
      %36 = arith.mulf %34, %35 : vector<1x32xf32>
      %c0_22 = arith.constant 0 : index
      %c0_23 = arith.constant 0 : index
      %37 = vector.load %arg5[%c0_22, %c0_23] : memref<1x32xf32, #tpu.memory_space<vmem>>, vector<1x32xf32>
      %cst_24 = arith.constant 1.250000e-01 : f32
      %38 = vector.broadcast %cst_24 : f32 to vector<1x32xf32>
      %39 = arith.mulf %37, %38 : vector<1x32xf32>
      %40 = arith.subf %36, %39 : vector<1x32xf32>
      %41 = arith.mulf %40, %40 : vector<1x32xf32>
      %cst_25 = arith.constant dense<0.000000e+00> : vector<1xf32>
      %42 = vector.multi_reduction <add>, %41, %cst_25 [1] : vector<1x32xf32> to vector<1xf32>
      %43 = vector.shape_cast %42 : vector<1xf32> to vector<1x1xf32>
      %c0_26 = arith.constant 0 : index
      %c0_27 = arith.constant 0 : index
      %44 = vector.load %arg3[%c0_26, %c0_27] : memref<1x1xf32, #tpu.memory_space<vmem>>, vector<1x1xf32>
      tpu.vector_store %arg3[%c0_26, %c0_27], %43 {strides = array<i32>} : memref<1x1xf32, #tpu.memory_space<vmem>>, vector<1x1xf32>,
    } else {
    }
    return
  }
  func.func @transform_0(%arg0: i32) -> (i32, i32) {
    %c0_i32 = arith.constant 0 : i32
    %c0_i32_0 = arith.constant 0 : i32
    return %arg0, %c0_i32 : i32, i32
  }
  func.func @transform_1(%arg0: i32) -> (i32, i32) {
    %c0_i32 = arith.constant 0 : i32
    %c0_i32_0 = arith.constant 0 : i32
    return %arg0, %c0_i32 : i32, i32
  }
  func.func @transform_2(%arg0: i32) -> (i32, i32) {
    %c0_i32 = arith.constant 0 : i32
    %c0_i32_0 = arith.constant 0 : i32
    %c0_i32_1 = arith.constant 0 : i32
    return %c0_i32, %c0_i32_0 : i32, i32
  }
}

</mosaic_0001>

<bundles_post_ra>
// kernel: tpu_custom_call.1
= control target key start
LH: loop header
LB: loop body
LE: loop exit
PB: predicated region body
PF: predicated region fallthrough
CT: control target
= control target key end

     0   :  { %7 = vsyncpa [#allocation5], 0  ;;  %s228_s0 = inlined_call_operand.hbm [shape: f32[8,32], index: 0, kind: input, shape index: {}]   ;;  %s229_s1 = inlined_call_operand.hbm [shape: f32[8,32], index: 1, kind: input, shape index: {}]   ;;  %s230_s2 = inlined_call_operand.hbm [shape: f32[1,1], index: 2, kind: output, shape index: {}]  }
   0x1   :  { %8 = vsyncpa [#allocation8], 0 }
   0x2   :  { %9 = vsyncpa [#allocation6], 0  ;;  %s15_s11 = sshll.u32 %s228_s0, 4  ;;  %s195_s12 = smov [#allocation4]   ;;  %s16_s11 = int_to_ptr.hbm [resolvable:$true] %s15_s11 }
   0x3   :  { %s17_s13 = sshll.u32 %s195_s12, 4  ;;  %s26_s16 = sshll.u32 %s229_s1, 4  ;;  %s18_s13 = int_to_ptr.vmem [resolvable:$true] %s17_s13  ;;  %s27_s16 = int_to_ptr.hbm [resolvable:$true] %s26_s16 }
   0x4   :  { %20 = dma.hbm_to_vmem [thread:$0]  %s16_s11, 128, %s18_s13, [#allocation5]  }
   0x5   :  { %s196_s17 = smov [#allocation7]  }
   0x6   :  { %s28_s18 = sshll.u32 %s196_s17, 4  ;;  %s29_s18 = int_to_ptr.vmem [resolvable:$true] %s28_s18 }
   0x7   :  { %31 = dma.hbm_to_vmem [thread:$0]  %s27_s16, 128, %s29_s18, [#allocation8]  }
   0x8   :  { %189 = dma.done.wait [#allocation5], 128  }
   0x9   :  { %190 = vsyncadd [#allocation5], 4294967168 }
   0xa   :  { %191 = dma.done.wait [#allocation8], 128  }
   0xb   :  { %192 = vsyncadd [#allocation8], 4294967168  ;;  %vm44_vm0 = vcmask 253952   ;;  %v197_v0 = vmov 0.0   ;;  %vm60_vm1 = vcmask 261120   ;;  %v53_v1 = vld [vmem:[#allocation4] sm:$0xff] }
   0xc   :  { %45 = vst.msk [vmem:[#allocation2] sm:$0x1] %vm44_vm0, %v197_v0  ;;  %v57_v2 = vld [vmem:[#allocation7] sm:$0xff]  ;;  %v61_v3 = vsel %vm60_vm1, %v53_v1, 0.0  ;;  %s198_s0 = smov [#allocation9]   ;;  %s102_s21 = sshll.u32 %s230_s2, 4  ;;  %s103_s21 = int_to_ptr.hbm [resolvable:$true] %s102_s21 }
   0xd   :  { %46 = vst.msk [vmem:[#allocation3] sm:$0x1] %vm44_vm0, %v197_v0  ;;  %v72_v4 = vsel %vm60_vm1, %v57_v2, 0.0  ;;  %v62_v5 = vrot.slane %v61_v3, 4  ;;  %s100_s1 = sshll.u32 %s198_s0, 4  ;;  %vm93_vm2 = vcmask 0   ;;  %s101_s1 = int_to_ptr.vmem [resolvable:$true] %s100_s1 }
   0xe   :  { %v73_v6 = vrot.slane %v72_v4, 4 }
   0xf   :  { %v63_v7 = vadd.f32 %v62_v5, %v61_v3 }
  0x10   :  { %v74_v8 = vadd.f32 %v73_v6, %v72_v4 }
  0x11   :  { %v64_v9 = vrot.slane %v63_v7, 2 }
  0x12   :  { %v75_v10 = vrot.slane %v74_v8, 2 }
  0x13   :  { %v65_v11 = vadd.f32 %v64_v9, %v63_v7  ;;  %v59_v15 = vld [vmem:[#allocation2] sm:$0x1] }
  0x14   :  { %v76_v12 = vadd.f32 %v75_v10, %v74_v8  ;;  %v71_v16 = vld [vmem:[#allocation3] sm:$0x1] }
  0x15   :  { %v66_v13 = vrot.slane %v65_v11, 1 }
  0x16   :  { %v77_v14 = vrot.slane %v76_v12, 1 }
  0x17   :  { %v67_v17 = vadd.f32 %v66_v13, %v65_v11 }
  0x18   :  { %v78_v18 = vadd.f32 %v77_v14, %v76_v12 }
  0x19   :  { %v68_v19 = vadd.f32 %v67_v17, %v59_v15 }
  0x1a   :  { %v79_v20 = vadd.f32 %v78_v18, %v71_v16 }
  0x1b   :  { %70 = vst.msk [vmem:[#allocation2] sm:$0x1] %vm44_vm0, %v68_v19 }
  0x1c   :  { %80 = vst.msk [vmem:[#allocation3] sm:$0x1] %vm44_vm0, %v79_v20 }
  0x22   :  { %v84_v21 = vld [vmem:[#allocation2] sm:$0x1] }
  0x23   :  { %v85_v22 = vmul.f32 0.125, %v84_v21  ;;  %v86_v23 = vld [vmem:[#allocation3] sm:$0x1] }
  0x24   :  { %v87_v24 = vmul.f32 0.125, %v86_v23 }
  0x26   :  { %v88_v25 = vsub.f32 %v85_v22, %v87_v24 }
  0x28   :  { %v89_v26 = vmul.f32 %v88_v25, %v88_v25 }
  0x2a   :  { %v90_v27 = vsel %vm44_vm0, %v89_v26, 0.0 }
  0x2b   :  { %91 = vadd.xlane.f32.xlu0 %v90_v27 }
  0x9e   :  { %v92_v28 = vpop.xlane.xlu0 %91 }
  0x9f   :  { %94 = vst.msk [vmem:[#allocation9] sm:$0x1] %vm93_vm2, %v92_v28 }
  0xa0   :  { %105 = dma.vmem_to_hbm [thread:$0]  %s101_s1, 16, %s103_s21, [#allocation6]  }
  0xa1   :  { %193 = dma.done.wait [#allocation6], 16  }
  0xa2   :  { %194 = vsyncadd [#allocation6], 4294967280 }
  0xa3   :  { %110 = vsyncpa [#allocation5], 1 }
  0xa4   :  { %111 = vsyncpa [#allocation8], 1 }
  0xa5   :  { %112 = vsyncpa [#allocation6], 1 }

</bundles_post_ra>
